<compile_context>
chip_gen: v6e
topology: v6e:2x2x1
jax: 0.10.0
libtpu: 0.0.40
codegen_flags: <defaults>
</compile_context>

<pallas_src>
import jax
import jax.numpy as jnp
from jax.experimental import pallas as pl
from jax.experimental.pallas import tpu as pltpu

_LANE = 128


def _ceil_to(x, m):
    return ((x + m - 1) // m) * m


def _pad2d(x, rows, cols):
    r, c = x.shape
    return jnp.pad(x, ((0, rows - r), (0, cols - c)))


# ----------------------------------------------------------------------------- kernel
def _structural_fused_kernel(adj_ref, e0_ref, e1_ref, ns0_ref, ns1_ref, h_ref,
                             w0_ref, b0_ref, w1_ref, b1_ref, o_ref):
    """Fused depth-2 StructuralModel forward (full graph resident).

    adj_ref : (N, N)    bf16 {0,1} adjacency, A[i, j] = edge j -> i
    e*_ref  : (N, N)    bf16 per-layer sampled edge weights (prior draw)
    ns*_ref : (N, 1)    f32  per-layer src-side D^-1/2 of weighted degree (column)
    h_ref   : (N, Fp)   f32  node features, feature dim zero-padded to 128
    w*_ref  : (Fp, Fp)  bf16 dense GCN weights, zero-padded to lane-dense widths
    b*_ref  : (1, Fp)   f32  biases, zero-padded
    o_ref   : (N, Fp)   f32  output node features (padded; wrapper slices)
    """
    adj = adj_ref[...].astype(jnp.float32)

    def layer(e_ref, ns_ref, w_ref, b_ref, h):
        # Weighted adjacency for this layer, fused in-kernel; f32 for norm math.
        a = adj * e_ref[...].astype(jnp.float32)

        # Weighted dst degree: cheap lane reduce; D_dst^-1/2 folded AFTER the
        # aggregation matmul (O(N*F) row scaling instead of an O(N^2) pass).
        deg_dst = jnp.sum(a, axis=1, keepdims=True)                  # (N, 1)
        norm_dst = jnp.where(deg_dst > 0.0, jax.lax.rsqrt(deg_dst), 0.0)

        # Src-side norm applied to H rows (O(N*F)), not to A columns (O(N^2)).
        h_s = h * ns_ref[...]                                        # (N, F) f32

        # Aggregate -> dst-norm -> project.  bf16 MXU operands, f32 accumulation.
        m = jnp.dot(a.astype(jnp.bfloat16), h_s.astype(jnp.bfloat16),
                    preferred_element_type=jnp.float32)              # (N, F)
        m = m * norm_dst
        z = jnp.dot(m.astype(jnp.bfloat16), w_ref[...],
                    preferred_element_type=jnp.float32) + b_ref[...]
        return jnp.maximum(z, 0.0)                                   # ReLU

    h1 = layer(e0_ref, ns0_ref, w0_ref, b0_ref, h_ref[...])
    h2 = layer(e1_ref, ns1_ref, w1_ref, b1_ref, h1)
    o_ref[...] = h2.astype(o_ref.dtype)


# ----------------------------------------------------------------------------- wrapper
def structural_model_forward(adj_mask, h, params, edge_weights):
    """StructuralModel.forward: depth=2 layers of (weighted GCN -> ReLU), one pallas_call."""
    (w0, b0), (w1, b1) = params
    e0, e1 = edge_weights
    n, f_in = h.shape
    f_hid = w0.shape[1]
    f_out = w1.shape[1]

    fp_in = _ceil_to(f_in, _LANE)
    fp_hid = _ceil_to(f_hid, _LANE)
    fp_out = _ceil_to(f_out, _LANE)

    # bf16 edge tensors: halves the dominant 3*N^2 HBM read. {0,1} mask is exact,
    # sigmoid weights round harmlessly; norm math stays f32 on the rounded values.
    adj_bf = adj_mask.astype(jnp.bfloat16)
    e0_bf = e0.astype(jnp.bfloat16)
    e1_bf = e1.astype(jnp.bfloat16)

    def src_norm_col(e_bf):
        a = adj_mask.astype(jnp.float32) * e_bf.astype(jnp.float32)
        deg = a.sum(axis=0)
        return jnp.where(deg > 0.0, jax.lax.rsqrt(deg), 0.0)[:, None]  # (N, 1)

    ns0 = src_norm_col(e0_bf)
    ns1 = src_norm_col(e1_bf)

    # Lane-dense (128-wide) zero padding of all feature dims; weights downcast to bf16.
    h_p = _pad2d(h.astype(jnp.float32), n, fp_in)
    w0_p = _pad2d(w0.astype(jnp.float32), fp_in, fp_hid).astype(jnp.bfloat16)
    b0_p = _pad2d(b0.reshape(1, -1).astype(jnp.float32), 1, fp_hid)
    w1_p = _pad2d(w1.astype(jnp.float32), fp_hid, fp_out).astype(jnp.bfloat16)
    b1_p = _pad2d(b1.reshape(1, -1).astype(jnp.float32), 1, fp_out)

    inputs = (adj_bf, e0_bf, e1_bf, ns0, ns1, h_p, w0_p, b0_p, w1_p, b1_p)

    # Residency gate: the fused two-layer scheme needs adj/e0/e1 plus all of H1 in
    # VMEM.  Keep an explicit, conservative budget (safe on v7x's 32 MiB scoped /
    # 64 MiB physical VMEM) and fail loudly beyond it.
    in_bytes = sum(int(x.size) * x.dtype.itemsize for x in inputs)
    live_bytes = in_bytes + n * max(fp_in, fp_hid, fp_out) * 4 * 3 + n * fp_out * 4
    if live_bytes > 8 * 2 ** 20:
        # TODO(synk): tiled per-layer fallback (dst-row parallel grid, H1 in HBM).
        raise NotImplementedError("graph too large for the fused full-residency kernel")
    vmem_limit = int(min(32 * 2 ** 20, max(4 * 2 ** 20, 4 * live_bytes)))

    vmem = pltpu.MemorySpace.VMEM

    def full_spec(arr):
        return pl.BlockSpec(arr.shape, lambda: (0, 0), memory_space=vmem)

    out_p = pl.pallas_call(
        _structural_fused_kernel,
        out_shape=jax.ShapeDtypeStruct((n, fp_out), jnp.float32),
        in_specs=[full_spec(x) for x in inputs],
        out_specs=pl.BlockSpec((n, fp_out), lambda: (0, 0), memory_space=vmem),
        compiler_params=pltpu.CompilerParams(vmem_limit_bytes=vmem_limit),
    )(*inputs)
    return out_p[:, :f_out]


def structural_model_reference(adj_mask, h, params, edge_weights):
    """Pure-JAX f32 reference of the same forward pass (for correctness check)."""
    for (w, b), e_w in zip(params, edge_weights):
        a = adj_mask * e_w
        deg_dst = a.sum(axis=1, keepdims=True)
        deg_src = a.sum(axis=0, keepdims=True)
        norm_dst = jnp.where(deg_dst > 0, 1.0 / jnp.sqrt(deg_dst), 0.0)
        norm_src = jnp.where(deg_src > 0, 1.0 / jnp.sqrt(deg_src), 0.0)
        a_hat = norm_dst * a * norm_src
        h = jnp.maximum(a_hat @ h @ w + b, 0.0)
    return h


# ----------------------------------------------------------------------------- main
if __name__ == "__main__":
    # Small config consistent with the module: depth=2, edge_features=1,
    # proj_in=False, proj_out=False (defaults).
    N = 8                 # number of nodes
    IN_FEATURES = 16
    HIDDEN_FEATURES = 32
    OUT_FEATURES = 16

    key = jax.random.PRNGKey(0)
    k_h, k_w0, k_b0, k_w1, k_b1, k_e0, k_e1 = jax.random.split(key, 7)

    # Node features.
    h0 = jax.random.normal(k_h, (N, IN_FEATURES), dtype=jnp.float32)

    # Small directed graph (ring + a few chords), dense {0,1} adjacency A[dst, src].
    src = jnp.array([0, 1, 2, 3, 4, 5, 6, 7, 0, 2, 4, 6], dtype=jnp.int32)
    dst = jnp.array([1, 2, 3, 4, 5, 6, 7, 0, 4, 6, 0, 2], dtype=jnp.int32)
    adj_mask = jnp.zeros((N, N), dtype=jnp.float32).at[dst, src].set(1.0)

    # Deterministic layer parameters (Glorot-ish scaling).
    def glorot(k, fan_in, fan_out):
        s = jnp.sqrt(6.0 / (fan_in + fan_out))
        return jax.random.uniform(k, (fan_in, fan_out), jnp.float32, -s, s)

    params = [
        (glorot(k_w0, IN_FEATURES, HIDDEN_FEATURES), jnp.zeros((HIDDEN_FEATURES,), jnp.float32)),
        (glorot(k_w1, HIDDEN_FEATURES, OUT_FEATURES), jnp.zeros((OUT_FEATURES,), jnp.float32)),
    ]

    # One deterministic sample from the edge prior per layer: sigmoid(Normal(0,1)),
    # edge_features = 1 (a scalar weight per edge).
    edge_weights = [
        jax.nn.sigmoid(jax.random.normal(k_e0, (N, N), dtype=jnp.float32)),
        jax.nn.sigmoid(jax.random.normal(k_e1, (N, N), dtype=jnp.float32)),
    ]

    out = structural_model_forward(adj_mask, h0, params, edge_weights)
    out = jax.block_until_ready(out)

    ref = structural_model_reference(adj_mask, h0, params, edge_weights)
    assert out.shape == (N, OUT_FEATURES)
    # bf16 MXU operands + bf16 edge weights vs. pure-f32 reference -> loosened tolerance.
    assert jnp.allclose(out, ref, atol=3e-2, rtol=3e-2), float(jnp.max(jnp.abs(out - ref)))

    print("KERNEL_OK")
</pallas_src>

<mosaic_0001>
module attributes {stable_mosaic.version = 11 : i64} {
  func.func @_structural_fused_kernel(%arg0: memref<8x8xbf16, #tpu.memory_space<vmem>>, %arg1: memref<8x8xbf16, #tpu.memory_space<vmem>>, %arg2: memref<8x8xbf16, #tpu.memory_space<vmem>>, %arg3: memref<8x1xf32, #tpu.memory_space<vmem>>, %arg4: memref<8x1xf32, #tpu.memory_space<vmem>>, %arg5: memref<8x128xf32, #tpu.memory_space<vmem>>, %arg6: memref<128x128xbf16, #tpu.memory_space<vmem>>, %arg7: memref<1x128xf32, #tpu.memory_space<vmem>>, %arg8: memref<128x128xbf16, #tpu.memory_space<vmem>>, %arg9: memref<1x128xf32, #tpu.memory_space<vmem>>, %arg10: memref<8x128xf32, #tpu.memory_space<vmem>>) attributes {dimension_semantics = [], scalar_prefetch = 0 : i64, scratch_operands = 0 : i64, tpu.core_type = #tpu.core_type<tc>} {
    %c0 = arith.constant 0 : index
    %c0_0 = arith.constant 0 : index
    %0 = vector.load %arg0[%c0, %c0_0] : memref<8x8xbf16, #tpu.memory_space<vmem>>, vector<8x8xbf16>
    %1 = arith.extf %0 : vector<8x8xbf16> to vector<8x8xf32>
    %c0_1 = arith.constant 0 : index
    %c0_2 = arith.constant 0 : index
    %2 = vector.load %arg5[%c0_1, %c0_2] : memref<8x128xf32, #tpu.memory_space<vmem>>, vector<8x128xf32>
    %c0_3 = arith.constant 0 : index
    %c0_4 = arith.constant 0 : index
    %3 = vector.load %arg1[%c0_3, %c0_4] : memref<8x8xbf16, #tpu.memory_space<vmem>>, vector<8x8xbf16>
    %4 = arith.extf %3 : vector<8x8xbf16> to vector<8x8xf32>
    %5 = arith.mulf %1, %4 : vector<8x8xf32>
    %cst = arith.constant dense<0.000000e+00> : vector<8xf32>
    %6 = vector.multi_reduction <add>, %5, %cst [1] : vector<8x8xf32> to vector<8xf32>
    %7 = vector.shape_cast %6 : vector<8xf32> to vector<8x1xf32>
    %cst_5 = arith.constant 0.000000e+00 : f32
    %8 = vector.broadcast %cst_5 : f32 to vector<8x1xf32>
    %9 = arith.cmpf ogt, %7, %8 : vector<8x1xf32>
    %10 = math.rsqrt %7 : vector<8x1xf32>
    %cst_6 = arith.constant 0.000000e+00 : f32
    %11 = vector.broadcast %cst_6 : f32 to vector<8x1xf32>
    %12 = arith.select %9, %10, %11 : vector<8x1xi1>, vector<8x1xf32>
    %c0_7 = arith.constant 0 : index
    %c0_8 = arith.constant 0 : index
    %13 = vector.load %arg3[%c0_7, %c0_8] : memref<8x1xf32, #tpu.memory_space<vmem>>, vector<8x1xf32>
    %14 = vector.broadcast %13 : vector<8x1xf32> to vector<8x128xf32>
    %15 = arith.mulf %2, %14 : vector<8x128xf32>
    %16 = arith.truncf %5 : vector<8x8xf32> to vector<8x8xbf16>
    %17 = arith.truncf %15 : vector<8x128xf32> to vector<8x128xbf16>
    %cst_9 = arith.constant dense<0.000000e+00> : vector<8x128xf32>
    %18 = tpu.matmul %16, %17, %cst_9 {dimension_numbers = #tpu.dot_dimension_numbers<[1], [0], [0], [1], [0, 0, 1, 1], [], []>} : vector<8x8xbf16>, vector<8x128xbf16>, vector<8x128xf32> -> vector<8x128xf32>
    %19 = vector.broadcast %12 : vector<8x1xf32> to vector<8x128xf32>
    %20 = arith.mulf %18, %19 : vector<8x128xf32>
    %21 = arith.truncf %20 : vector<8x128xf32> to vector<8x128xbf16>
    %c0_10 = arith.constant 0 : index
    %c0_11 = arith.constant 0 : index
    %22 = vector.load %arg6[%c0_10, %c0_11] : memref<128x128xbf16, #tpu.memory_space<vmem>>, vector<128x128xbf16>
    %cst_12 = arith.constant dense<0.000000e+00> : vector<8x128xf32>
    %23 = tpu.matmul %21, %22, %cst_12 {dimension_numbers = #tpu.dot_dimension_numbers<[1], [0], [0], [1], [0, 0, 1, 1], [], []>} : vector<8x128xbf16>, vector<128x128xbf16>, vector<8x128xf32> -> vector<8x128xf32>
    %c0_13 = arith.constant 0 : index
    %c0_14 = arith.constant 0 : index
    %24 = vector.load %arg7[%c0_13, %c0_14] : memref<1x128xf32, #tpu.memory_space<vmem>>, vector<1x128xf32>
    %25 = vector.broadcast %24 : vector<1x128xf32> to vector<8x128xf32>
    %26 = arith.addf %23, %25 : vector<8x128xf32>
    %cst_15 = arith.constant 0.000000e+00 : f32
    %27 = vector.broadcast %cst_15 : f32 to vector<8x128xf32>
    %28 = arith.maximumf %26, %27 : vector<8x128xf32>
    %c0_16 = arith.constant 0 : index
    %c0_17 = arith.constant 0 : index
    %29 = vector.load %arg2[%c0_16, %c0_17] : memref<8x8xbf16, #tpu.memory_space<vmem>>, vector<8x8xbf16>
    %30 = arith.extf %29 : vector<8x8xbf16> to vector<8x8xf32>
    %31 = arith.mulf %1, %30 : vector<8x8xf32>
    %cst_18 = arith.constant dense<0.000000e+00> : vector<8xf32>
    %32 = vector.multi_reduction <add>, %31, %cst_18 [1] : vector<8x8xf32> to vector<8xf32>
    %33 = vector.shape_cast %32 : vector<8xf32> to vector<8x1xf32>
    %cst_19 = arith.constant 0.000000e+00 : f32
    %34 = vector.broadcast %cst_19 : f32 to vector<8x1xf32>
    %35 = arith.cmpf ogt, %33, %34 : vector<8x1xf32>
    %36 = math.rsqrt %33 : vector<8x1xf32>
    %cst_20 = arith.constant 0.000000e+00 : f32
    %37 = vector.broadcast %cst_20 : f32 to vector<8x1xf32>
    %38 = arith.select %35, %36, %37 : vector<8x1xi1>, vector<8x1xf32>
    %c0_21 = arith.constant 0 : index
    %c0_22 = arith.constant 0 : index
    %39 = vector.load %arg4[%c0_21, %c0_22] : memref<8x1xf32, #tpu.memory_space<vmem>>, vector<8x1xf32>
    %40 = vector.broadcast %39 : vector<8x1xf32> to vector<8x128xf32>
    %41 = arith.mulf %28, %40 : vector<8x128xf32>
    %42 = arith.truncf %31 : vector<8x8xf32> to vector<8x8xbf16>
    %43 = arith.truncf %41 : vector<8x128xf32> to vector<8x128xbf16>
    %cst_23 = arith.constant dense<0.000000e+00> : vector<8x128xf32>
    %44 = tpu.matmul %42, %43, %cst_23 {dimension_numbers = #tpu.dot_dimension_numbers<[1], [0], [0], [1], [0, 0, 1, 1], [], []>} : vector<8x8xbf16>, vector<8x128xbf16>, vector<8x128xf32> -> vector<8x128xf32>
    %45 = vector.broadcast %38 : vector<8x1xf32> to vector<8x128xf32>
    %46 = arith.mulf %44, %45 : vector<8x128xf32>
    %47 = arith.truncf %46 : vector<8x128xf32> to vector<8x128xbf16>
    %c0_24 = arith.constant 0 : index
    %c0_25 = arith.constant 0 : index
    %48 = vector.load %arg8[%c0_24, %c0_25] : memref<128x128xbf16, #tpu.memory_space<vmem>>, vector<128x128xbf16>
    %cst_26 = arith.constant dense<0.000000e+00> : vector<8x128xf32>
    %49 = tpu.matmul %47, %48, %cst_26 {dimension_numbers = #tpu.dot_dimension_numbers<[1], [0], [0], [1], [0, 0, 1, 1], [], []>} : vector<8x128xbf16>, vector<128x128xbf16>, vector<8x128xf32> -> vector<8x128xf32>
    %c0_27 = arith.constant 0 : index
    %c0_28 = arith.constant 0 : index
    %50 = vector.load %arg9[%c0_27, %c0_28] : memref<1x128xf32, #tpu.memory_space<vmem>>, vector<1x128xf32>
    %51 = vector.broadcast %50 : vector<1x128xf32> to vector<8x128xf32>
    %52 = arith.addf %49, %51 : vector<8x128xf32>
    %cst_29 = arith.constant 0.000000e+00 : f32
    %53 = vector.broadcast %cst_29 : f32 to vector<8x128xf32>
    %54 = arith.maximumf %52, %53 : vector<8x128xf32>
    %c0_30 = arith.constant 0 : index
    %c0_31 = arith.constant 0 : index
    %55 = vector.load %arg10[%c0_30, %c0_31] : memref<8x128xf32, #tpu.memory_space<vmem>>, vector<8x128xf32>
    tpu.vector_store %arg10[%c0_30, %c0_31], %54 {strides = array<i32>} : memref<8x128xf32, #tpu.memory_space<vmem>>, vector<8x128xf32>,
    return
  }
}

</mosaic_0001>

<bundles_post_ra>
// kernel: tpu_custom_call.1
= control target key start
LH: loop header
LB: loop body
LE: loop exit
PB: predicated region body
PF: predicated region fallthrough
CT: control target
= control target key end

     0   :  { %15 = vsyncpa [#allocation3], 0  ;;  %s761_s0 = inlined_call_operand.vmem [shape: bf16[8,8], index: 0, kind: input, shape index: {}]   ;;  %s762_s1 = inlined_call_operand.vmem [shape: bf16[8,8], index: 1, kind: input, shape index: {}]   ;;  %s763_s2 = inlined_call_operand.vmem [shape: bf16[8,8], index: 2, kind: input, shape index: {}]   ;;  %s764_s3 = inlined_call_operand.vmem [shape: f32[8,1], index: 3, kind: input, shape index: {}]   ;;  %s765_s4 = inlined_call_operand.vmem [shape: f32[8,1], index: 4, kind: input, shape index: {}]   ;;  %s766_s5 = inlined_call_operand.vmem [shape: f32[8,128], index: 5, kind: input, shape index: {}]   ;;  %s767_s6 = inlined_call_operand.hbm [shape: bf16[128,128], index: 6, kind: input, shape index: {}]   ;;  %s768_s7 = inlined_call_operand.vmem [shape: f32[1,128], index: 7, kind: input, shape index: {}]   ;;  %s769_s8 = inlined_call_operand.hbm [shape: bf16[128,128], index: 8, kind: input, shape index: {}]   ;;  %s770_s9 = inlined_call_operand.vmem [shape: f32[1,128], index: 9, kind: input, shape index: {}]   ;;  %s771_s10 = inlined_call_operand.hbm [shape: f32[8,128], index: 10, kind: output, shape index: {}]  }
   0x1   :  { %16 = vsyncpa [#allocation6], 0 }
   0x2   :  { %17 = vsyncpa [#allocation4], 0  ;;  %s633_s13 = smov [#allocation2]  }
   0x3   :  { %s35_s14 = sshll.u32 %s633_s13, 4  ;;  %s36_s14 = int_to_ptr.vmem [resolvable:$true] %s35_s14 }
   0x4   :  { %s575_s15 = scalar_lea.vmem %s36_s14, 1024  ;;  %p580_p1 = scmp.lt.s32.totalorder %s36_s14, %s36_s14 }
   0x5   :  { %p576_p0 = scmp.ne.s32.totalorder %s36_s14, %s575_s15  ;;  %p581_p2 = scmp.lt.s32.totalorder %s575_s15, %s575_s15 }
   0x7   :  { %p582_p3 = por %p581_p2, %p580_p1 }
   0x9   :  { %p583_p4 = pnand %p582_p3, %p576_p0 }
   0xb   :  { %586 = shalt.err (!%p583_p4)
}
   0xc   :  { %s634_s16 = smov 64   ;;  %s635_s17 = smov 4  }
   0xd   :  { %41 = dma.hbm_to_vmem [thread:$0]  %s767_s6, 1024, %s36_s14, [#allocation3], %s634_s16, %s634_s16, %s635_s17  }
   0xe   :  { %s636_s20 = smov [#allocation5]  }
   0xf   :  { %s49_s21 = sshll.u32 %s636_s20, 4  ;;  %s50_s21 = int_to_ptr.vmem [resolvable:$true] %s49_s21 }
  0x10   :  { %s595_s22 = scalar_lea.vmem %s50_s21, 1024  ;;  %p600_p6 = scmp.lt.s32.totalorder %s50_s21, %s50_s21 }
  0x11   :  { %p596_p5 = scmp.ne.s32.totalorder %s50_s21, %s595_s22  ;;  %p601_p7 = scmp.lt.s32.totalorder %s595_s22, %s595_s22 }
  0x13   :  { %p602_p8 = por %p601_p7, %p600_p6 }
  0x15   :  { %p603_p9 = pnand %p602_p8, %p596_p5 }
  0x17   :  { %606 = shalt.err (!%p603_p9)
}
  0x18   :  { %55 = dma.hbm_to_vmem [thread:$0]  %s769_s8, 1024, %s50_s21, [#allocation6], %s634_s16, %s634_s16, %s635_s17  }
  0x19   :  { %627 = dma.done.wait [#allocation3], 1024  }
  0x1a   :  { %628 = vsyncadd [#allocation3], 4294966272 }
  0x1b   :  { %629 = dma.done.wait [#allocation6], 1024  }
  0x1c   :  { %630 = vsyncadd [#allocation6], 4294966272  ;;  %v637_v0 = vmov 0   ;;  %v78_v1 = vld [vmem:[%s764_s3] sm:$0xff]  ;;  %v638_v2 = vmov 0.0   ;;  %vm639_vm0 = vmmov 0  }
  0x1d   :  { %545 = vset.pattern.permute.xlu0 %v637_v0  ;;  %546 = vset.pattern.permute.xlu1 %v637_v0  ;;  %v65_v3 = vld [vmem:[%s761_s0] sm:$0xf]  ;;  %vm71_vm1 = vcmask 64512   ;;  %vm90_vm2 = vcmask 1043456   ;;  %v547_v15 = vld [vmem:[#allocation2 + $0x38] sm:$0xff]   ;;  %v548_v16 = vld [vmem:[#allocation2 + $0x30] sm:$0xff]  }
  0x1e   :  { %485 = vmatprep.subr.bf16.mxu1 %v638_v2  ;;  %511 = vmatprep.subr.bf16.mxu0 %v638_v2  ;;  %v68_v4 = vld [vmem:[%s762_s1] sm:$0xf]  ;;  %v66_v5 = vunpack.c.l.bf16 %v65_v3  ;;  %v549_v17 = vld [vmem:[#allocation2 + $0x28] sm:$0xff]   ;;  %v551_v19 = vld [vmem:[#allocation2 + $0x18] sm:$0xff]   ;;  %s640_s12 = smov [#allocation7]  }
  0x1f   :  { %81 = vperm.xlu0 %545, %v78_v1   ;;  %487 = vmatprep.mubr.msk.bf16.mxu1 %vm639_vm0, %v638_v2  ;;  %v69_v6 = vunpack.c.l.bf16 %v68_v4  ;;  %v67_v9 = vld [vmem:[%s766_s5] sm:$0xff]  ;;  %v552_v20 = vld [vmem:[#allocation2 + $0x10] sm:$0xff]   ;;  %v553_v21 = vld [vmem:[#allocation2 + $0x8] sm:$0xff]   ;;  %s433_s13 = sshll.u32 %s640_s12, 4  ;;  %s434_s13 = int_to_ptr.vmem [resolvable:$true] %s433_s13 }
  0x20   :  { %513 = vmatprep.mubr.msk.bf16.mxu0 %vm639_vm0, %v638_v2  ;;  %v550_v18 = vld [vmem:[#allocation2 + $0x20] sm:$0xff]   ;;  %v555_v49 = vld [vmem:[#allocation5 + $0x38] sm:$0xff]   ;;  %v556_v50 = vld [vmem:[#allocation5 + $0x30] sm:$0xff]   ;;  %s607_s14 = scalar_lea.vmem %s434_s13, 128  ;;  %p612_p11 = scmp.lt.s32.totalorder %s434_s13, %s434_s13 }
  0x21   :  { %v70_v7 = vmul.f32 %v69_v6, %v66_v5  ;;  %v554_v22 = vld [vmem:[#allocation2] sm:$0xff]   ;;  %v557_v51 = vld [vmem:[#allocation5 + $0x28] sm:$0xff]   ;;  %v559_v53 = vld [vmem:[#allocation5 + $0x18] sm:$0xff]   ;;  %p608_p10 = scmp.ne.s32.totalorder %s434_s13, %s607_s14  ;;  %p613_p12 = scmp.lt.s32.totalorder %s607_s14, %s607_s14 }
  0x22   :  { %v257_v23 = vld [vmem:[%s765_s4] sm:$0xff]  ;;  %v560_v54 = vld [vmem:[#allocation5 + $0x10] sm:$0xff]   ;;  %v561_v55 = vld [vmem:[#allocation5 + $0x8] sm:$0xff]  }
  0x23   :  { %v72_v8 = vsel %vm71_vm1, %v70_v7, 0.0  ;;  %v85_v14 = vpack.c.bf16 %v70_v7, %v70_v7  ;;  %260 = vperm.xlu1 %546, %v257_v23   ;;  %v248_v33 = vld [vmem:[%s763_s2] sm:$0xf]  ;;  %p614_p13 = por %p613_p12, %p612_p11 }
  0x24   :  { %v249_v34 = vunpack.c.l.bf16 %v248_v33  ;;  %v444_v37 = vld [vmem:[%s768_s7] ss:$0 sm:$0xff] }
  0x25   :  { %v558_v52 = vld [vmem:[#allocation5 + $0x20] sm:$0xff]   ;;  %p615_p0 = pnand %p614_p13, %p608_p10 }
  0x26   :  { %v250_v35 = vmul.f32 %v249_v34, %v66_v5  ;;  %v562_v56 = vld [vmem:[#allocation5] sm:$0xff]  }
  0x27   :  { %v454_v3 = vld [vmem:[%s770_s9] ss:$0 sm:$0xff] }
  0x28   :  { %v251_v36 = vsel %vm71_vm1, %v250_v35, 0.0  ;;  %v264_v48 = vpack.c.bf16 %v250_v35, %v250_v35 }
  0x3e   :  { %73 = vadd.xlane.f32.xlu0 %v72_v8 }
  0x47   :  { %252 = vadd.xlane.f32.xlu1 %v251_v36 }
  0x9a   :  { %v82_v10 = vpop.permute.xlu0 %81 }
  0x9b   :  { %v84_v11 = vmul.f32 %v82_v10, %v67_v9 }
  0x9d   :  { %v86_v12 = vpack.c.bf16 %v84_v11, %v84_v11 }
  0x9e   :  { %v261_v41 = vpop.permute.xlu1 %260 }
  0x9f   :  { %v92_v13 = vsel %vm90_vm2, %v86_v12, 0 }
  0xa0   :  { %486 = vmatpush3.bf16.msra.mxu1 %v92_v13 }
  0xa1   :  { %491 = vmatprep.subr.bf16.mxu1 %v638_v2 }
  0xa3   :  { %488 = vmatmul.mubr.msk.bf16.vlgmr.msra.gmra.mxu1 %vm71_vm1, %v85_v14 }
  0xa4   :  { %492 = vmatpush3.bf16.msra.mxu1 %v547_v15  ;;  %507 = vmatprep.mubr.msk.bf16.mxu1 %vm639_vm0, %v638_v2 }
  0xa5   :  { %493 = vmatprep.subr.bf16.mxu1 %v638_v2 }
  0xa8   :  { %494 = vmatpush3.bf16.msra.mxu1 %v548_v16 }
  0xa9   :  { %495 = vmatprep.subr.bf16.mxu1 %v638_v2 }
  0xac   :  { %496 = vmatpush3.bf16.msra.mxu1 %v549_v17 }
  0xad   :  { %497 = vmatprep.subr.bf16.mxu1 %v638_v2 }
  0xb0   :  { %498 = vmatpush3.bf16.msra.mxu1 %v550_v18 }
  0xb1   :  { %499 = vmatprep.subr.bf16.mxu1 %v638_v2 }
  0xb4   :  { %500 = vmatpush3.bf16.msra.mxu1 %v551_v19 }
  0xb5   :  { %501 = vmatprep.subr.bf16.mxu1 %v638_v2 }
  0xb8   :  { %502 = vmatpush3.bf16.msra.mxu1 %v552_v20 }
  0xb9   :  { %503 = vmatprep.subr.bf16.mxu1 %v638_v2 }
  0xbc   :  { %504 = vmatpush3.bf16.msra.mxu1 %v553_v21 }
  0xbd   :  { %505 = vmatprep.subr.bf16.mxu1 %v638_v2 }
  0xc0   :  { %506 = vmatpush3.bf16.msra.mxu1 %v554_v22 }
  0xc7   :  { %v74_v24 = vpop.xlane.xlu0 %73 }
  0xc8   :  { %563 = vrsqrt.f32 %v74_v24  ;;  %vm75_vm3 = vcmp.gt.f32.partialorder %v74_v24, 0.0 }
  0xd0   :  { %v253_v57 = vpop.xlane.xlu1 %252 }
  0xd1   :  { %565 = vrsqrt.f32 %v253_v57  ;;  %vm254_vm4 = vcmp.gt.f32.partialorder %v253_v57, 0.0 }
  0xd5   :  { %v564_v25 = vpop.eup %563 }
  0xd6   :  { %v77_v26 = vsel %vm75_vm3, %v564_v25, 0.0 }
  0xde   :  { %v566_v58 = vpop.eup %565 }
  0xdf   :  { %v256_v59 = vsel %vm254_vm4, %v566_v58, 0.0 }
 0x163   :  { %v128_v27 = vpop.f32.mrf.mxu1 }
 0x164   :  { %v134_v28 = vmul.f32 %v128_v27, %v77_v26 }
 0x165   :  { %v489_v29 = vpop.f32.mrf.mxu1 }
 0x166   :  { %v135_v30 = vpack.c.bf16 %v134_v28, %v134_v28 }
 0x167   :  { %v131_v31 = vpop.f32.mrf.mxu1 }
 0x168   :  { %508 = vmatmul.mubr.bf16.vlgmr.msra.gmra.mxu1 %v135_v30 }
 0x169   :  { %v490_v32 = vpop.f32.mrf.mxu1 }
 0x228   :  { %v241_v38 = vpop.f32.mrf.mxu1 }
 0x229   :  { %v242_v39 = vadd.f32 %v444_v37, %v241_v38 }
 0x22a   :  { %v509_v40 = vpop.f32.mrf.mxu1 }
 0x22b   :  { %v247_v42 = vmax.f32 %v242_v39, 0.0 }
 0x22c   :  { %v244_v43 = vpop.f32.mrf.mxu1 }
 0x22d   :  { %v263_v44 = vmul.f32 %v261_v41, %v247_v42 }
 0x22e   :  { %v510_v45 = vpop.f32.mrf.mxu1 }
 0x22f   :  { %v265_v46 = vpack.c.bf16 %v263_v44, %v263_v44 }
 0x231   :  { %v270_v47 = vsel %vm90_vm2, %v265_v46, 0 }
 0x232   :  { %512 = vmatpush3.bf16.msra.mxu0 %v270_v47 }
 0x233   :  { %517 = vmatprep.subr.bf16.mxu0 %v638_v2 }
 0x235   :  { %514 = vmatmul.mubr.msk.bf16.vlgmr.msra.gmra.mxu0 %vm71_vm1, %v264_v48 }
 0x236   :  { %518 = vmatpush3.bf16.msra.mxu0 %v555_v49  ;;  %533 = vmatprep.mubr.msk.bf16.mxu0 %vm639_vm0, %v638_v2 }
 0x237   :  { %519 = vmatprep.subr.bf16.mxu0 %v638_v2 }
 0x23a   :  { %520 = vmatpush3.bf16.msra.mxu0 %v556_v50 }
 0x23b   :  { %521 = vmatprep.subr.bf16.mxu0 %v638_v2 }
 0x23e   :  { %522 = vmatpush3.bf16.msra.mxu0 %v557_v51 }
 0x23f   :  { %523 = vmatprep.subr.bf16.mxu0 %v638_v2 }
 0x242   :  { %524 = vmatpush3.bf16.msra.mxu0 %v558_v52 }
 0x243   :  { %525 = vmatprep.subr.bf16.mxu0 %v638_v2 }
 0x246   :  { %526 = vmatpush3.bf16.msra.mxu0 %v559_v53 }
 0x247   :  { %527 = vmatprep.subr.bf16.mxu0 %v638_v2 }
 0x24a   :  { %528 = vmatpush3.bf16.msra.mxu0 %v560_v54 }
 0x24b   :  { %529 = vmatprep.subr.bf16.mxu0 %v638_v2 }
 0x24e   :  { %530 = vmatpush3.bf16.msra.mxu0 %v561_v55 }
 0x24f   :  { %531 = vmatprep.subr.bf16.mxu0 %v638_v2 }
 0x252   :  { %532 = vmatpush3.bf16.msra.mxu0 %v562_v56 }
 0x2f5   :  { %v306_v60 = vpop.f32.mrf.mxu0 }
 0x2f6   :  { %v312_v61 = vmul.f32 %v306_v60, %v256_v59 }
 0x2f7   :  { %v515_v62 = vpop.f32.mrf.mxu0 }
 0x2f8   :  { %v313_v63 = vpack.c.bf16 %v312_v61, %v312_v61 }
 0x2f9   :  { %v309_v0 = vpop.f32.mrf.mxu0 }
 0x2fa   :  { %534 = vmatmul.mubr.bf16.vlgmr.msra.gmra.mxu0 %v313_v63 }
 0x2fb   :  { %v516_v1 = vpop.f32.mrf.mxu0 }
 0x3ba   :  { %v419_v4 = vpop.f32.mrf.mxu0 }
 0x3bb   :  { %v420_v2 = vadd.f32 %v454_v3, %v419_v4 }
 0x3bc   :  { %v535_v5 = vpop.f32.mrf.mxu0 }
 0x3bd   :  { %v425_v6 = vmax.f32 %v420_v2, 0.0 }
 0x3be   :  { %v422_v7 = vpop.f32.mrf.mxu0 }
 0x3bf   :  { %426 = vst [vmem:[#allocation7] sm:$0xff] %v425_v6 }
 0x3c0   :  { %v536_v8 = vpop.f32.mrf.mxu0 }
 0x3c1   :  { %618 = shalt.err (!%p615_p0)
}
 0x3c2   :  { %436 = dma.vmem_to_hbm [thread:$0]  %s434_s13, 128, %s771_s10, [#allocation4]  }
 0x3c3   :  { %631 = dma.done.wait [#allocation4], 128  }
 0x3c4   :  { %632 = vsyncadd [#allocation4], 4294967168 }
 0x3c5   :  { %440 = vsyncpa [#allocation3], 1 }
 0x3c6   :  { %441 = vsyncpa [#allocation6], 1 }
 0x3c7   :  { %442 = vsyncpa [#allocation4], 1 }

</bundles_post_ra>
